<compile_context>
chip_gen: v5e
topology: v5e:2x2
jax: 0.10.0
libtpu: 0.0.40
codegen_flags: <defaults>
</compile_context>

<pallas_src>
import jax
import jax.numpy as jnp
from jax.experimental import pallas as pl
from jax.experimental.pallas import tpu as pltpu


def _round_up(x: int, m: int) -> int:
    return ((x + m - 1) // m) * m


def _device_kind() -> str:
    try:
        return jax.devices()[0].device_kind.lower()
    except Exception:
        return ""


def _vmem_capacity_bytes(kind: str) -> int:
    """Per-TensorCore VMEM capacity (falls back to device_kind heuristics)."""
    try:
        return int(pltpu.get_tpu_info().vmem_capacity_bytes)
    except Exception:
        pass
    if "v7" in kind:
        return 64 * 1024 * 1024           # v7x: 64 MiB per TC
    return 128 * 1024 * 1024              # v5e / v6e: 128 MiB


def _mlp_kernel(x_ref, w1_ref, b1_ref, w2_ref, b2_ref, o_ref):
    # Fully fused MLP: hidden activation never leaves VMEM.
    # MXU feed dtype == weight dtype; accumulate in f32; bias + ReLU in f32 (VPU).
    xk = x_ref[...].astype(w1_ref.dtype)                      # in-VMEM cast (no HBM cost)
    h = jnp.dot(xk, w1_ref[...], preferred_element_type=jnp.float32)
    h = jnp.maximum(h + b1_ref[...], 0.0)
    out = jnp.dot(h.astype(w2_ref.dtype), w2_ref[...],
                  preferred_element_type=jnp.float32)
    out = out + b2_ref[...]                                    # 128-lane-wide compute
    o_ref[...] = out[:, : o_ref.shape[1]].astype(o_ref.dtype)  # store only real columns


def neural_net_forward(x, w1, b1, w2, b2, *, block_batch=2048,
                       matmul_dtype=jnp.bfloat16):
    """x: (B, n_inputs) (f32 or bf16); w1: (n_inputs, 128); b1: (128,);
       w2: (128, n_outputs); b2: (n_outputs,). Returns (B, n_outputs) f32."""
    B, n_in = x.shape
    hidden, n_out = w2.shape

    # --- lane-dense *compute* width: pad w2/b2 columns to a multiple of 128
    #     (tiny, resident arrays; the HBM output stream stays n_out wide). ---
    n_out_p = _round_up(max(n_out, 128), 128)
    if n_out_p != n_out:
        w2_p = jnp.zeros((hidden, n_out_p), w2.dtype).at[:, :n_out].set(w2)
        b2_p = jnp.zeros((n_out_p,), b2.dtype).at[:n_out].set(b2)
    else:
        w2_p, b2_p = w2, b2

    # Cast only the tiny resident weights to the MXU feed dtype; x streams in
    # its native dtype and is cast inside the kernel (no extra HBM pass).
    w1_c = w1.astype(matmul_dtype)
    w2_c = w2_p.astype(matmul_dtype)
    b1_2d = b1.reshape(1, hidden).astype(jnp.float32)
    b2_2d = b2_p.reshape(1, n_out_p).astype(jnp.float32)

    x_isz = jnp.dtype(x.dtype).itemsize
    w_isz = jnp.dtype(matmul_dtype).itemsize

    # --- per-generation VMEM budget -> batch tile size ---
    kind = _device_kind()
    budget = int(_vmem_capacity_bytes(kind) * 0.75)       # ~48 MiB v7x, ~96 MiB v5e/v6e
    # resident weights/biases are double-buffered by the default pipeline
    weight_bytes = 2 * ((n_in * hidden + hidden * n_out_p) * w_isz
                        + (hidden + n_out_p) * 4)
    # streamed double buffers + f32 intermediates, per batch row
    row_bytes = (2 * n_in * x_isz          # x double buffer
                 + 2 * n_out * 4           # out double buffer
                 + hidden * 4              # hidden activation (f32)
                 + n_out_p * 4)            # 128-wide pre-store intermediate (f32)

    tb_align = 16 if x_isz == 2 else 8     # bf16 rows pack in sublane pairs
    tb_cap = max(tb_align, (budget - weight_bytes) // row_bytes)
    TB = min(block_batch, tb_cap, _round_up(B, tb_align))
    TB = max(tb_align, (TB // tb_align) * tb_align)

    # v7x has 2 TensorCores: make the "parallel" batch axis span both (>=2,
    # even number of iterations) whenever the batch allows it.
    if "v7" in kind and B > tb_align:
        n_tiles = pl.cdiv(B, TB)
        if n_tiles % 2 == 1 and (n_tiles > 1 or TB > tb_align):
            TB = max(tb_align, _round_up(pl.cdiv(B, n_tiles + 1), tb_align))

    grid_n = pl.cdiv(B, TB)                # ragged last block handled by Pallas

    cost = pl.CostEstimate(
        flops=2 * B * (n_in * hidden + hidden * n_out_p),
        transcendentals=0,
        bytes_accessed=(x_isz * B * n_in                       # x stream (once)
                        + 4 * B * n_out                        # narrow out stream
                        + w_isz * (n_in * hidden + hidden * n_out_p)
                        + 4 * (hidden + n_out_p)),             # resident weights
    )

    return pl.pallas_call(
        _mlp_kernel,
        out_shape=jax.ShapeDtypeStruct((B, n_out), jnp.float32),
        grid_spec=pl.GridSpec(
            grid=(grid_n,),
            in_specs=[
                pl.BlockSpec((TB, n_in), lambda i: (i, 0)),        # x: streamed per tile
                pl.BlockSpec((n_in, hidden), lambda i: (0, 0)),    # w1: VMEM-resident
                pl.BlockSpec((1, hidden), lambda i: (0, 0)),       # b1: VMEM-resident
                pl.BlockSpec((hidden, n_out_p), lambda i: (0, 0)), # w2: VMEM-resident
                pl.BlockSpec((1, n_out_p), lambda i: (0, 0)),      # b2: VMEM-resident
            ],
            out_specs=pl.BlockSpec((TB, n_out), lambda i: (i, 0)), # true-width writeback
        ),
        compiler_params=pltpu.CompilerParams(
            dimension_semantics=("parallel",),   # megacore sharding on v7x
            vmem_limit_bytes=budget,             # per-generation scoped VMEM limit
        ),
        cost_estimate=cost,
    )(x, w1_c, b1_2d, w2_c, b2_2d)


def init_params(key, n_inputs, n_outputs, hidden=128):
    """Deterministic init mirroring PyTorch nn.Linear default (uniform +/- 1/sqrt(fan_in))."""
    k1, k2, k3, k4 = jax.random.split(key, 4)
    bound1 = 1.0 / jnp.sqrt(n_inputs)
    bound2 = 1.0 / jnp.sqrt(hidden)
    w1 = jax.random.uniform(k1, (n_inputs, hidden), jnp.float32, -bound1, bound1)
    b1 = jax.random.uniform(k2, (hidden,), jnp.float32, -bound1, bound1)
    w2 = jax.random.uniform(k3, (hidden, n_outputs), jnp.float32, -bound2, bound2)
    b2 = jax.random.uniform(k4, (n_outputs,), jnp.float32, -bound2, bound2)
    return w1, b1, w2, b2


if __name__ == "__main__":
    # TODO(synk): fit/score (CrossEntropyLoss + Adam training loop, DataLoader) are
    # host-side training utilities, not part of the forward pass; not implemented.
    key = jax.random.PRNGKey(0)
    n_inputs, n_outputs, batch = 32, 16, 8

    k_x, k_p = jax.random.split(key)
    x = jax.random.normal(k_x, (batch, n_inputs), dtype=jnp.float32)
    w1, b1, w2, b2 = init_params(k_p, n_inputs, n_outputs)

    ref = jnp.maximum(x @ w1 + b1, 0.0) @ w2 + b2

    # f32 MXU feed: tight tolerance.
    out = neural_net_forward(x, w1, b1, w2, b2, matmul_dtype=jnp.float32)
    out = jax.block_until_ready(out)
    assert out.shape == (batch, n_outputs)
    assert jnp.allclose(out, ref, atol=1e-5, rtol=1e-5)

    # default bf16 MXU feed (f32 accumulation), f32 x stream: looser tolerance.
    out_bf = jax.block_until_ready(neural_net_forward(x, w1, b1, w2, b2))
    assert out_bf.shape == (batch, n_outputs)
    assert jnp.allclose(out_bf, ref, atol=5e-2, rtol=5e-2)

    # caller-supplied bf16 x: halves the dominant HBM read stream, same kernel.
    out_bf_x = jax.block_until_ready(
        neural_net_forward(x.astype(jnp.bfloat16), w1, b1, w2, b2))
    assert out_bf_x.shape == (batch, n_outputs)
    assert jnp.allclose(out_bf_x, ref, atol=5e-2, rtol=5e-2)

    print("KERNEL_OK")
</pallas_src>

<mosaic_0001>
module attributes {stable_mosaic.version = 11 : i64} {
  func.func @_mlp_kernel(%arg0: i32, %arg1: memref<8x32xf32, #tpu.memory_space<vmem>>, %arg2: memref<32x128xf32, #tpu.memory_space<vmem>>, %arg3: memref<1x128xf32, #tpu.memory_space<vmem>>, %arg4: memref<128x128xf32, #tpu.memory_space<vmem>>, %arg5: memref<1x128xf32, #tpu.memory_space<vmem>>, %arg6: memref<8x16xf32, #tpu.memory_space<vmem>>) attributes {dimension_semantics = [#tpu.dimension_semantics<parallel>], iteration_bounds = array<i64: 1>, scalar_prefetch = 0 : i64, scratch_operands = 0 : i64, tpu.core_type = #tpu.core_type<tc>, window_params = [{transform_indices = @transform_0, window_bounds = array<i64: 8, 32>}, {pipeline_mode = #tpu.pipeline_mode<synchronous>, transform_indices = @transform_1, window_bounds = array<i64: 32, 128>}, {pipeline_mode = #tpu.pipeline_mode<synchronous>, transform_indices = @transform_2, window_bounds = array<i64: 1, 128>}, {pipeline_mode = #tpu.pipeline_mode<synchronous>, transform_indices = @transform_3, window_bounds = array<i64: 128, 128>}, {pipeline_mode = #tpu.pipeline_mode<synchronous>, transform_indices = @transform_4, window_bounds = array<i64: 1, 128>}, {transform_indices = @transform_5, window_bounds = array<i64: 8, 16>}]} {
    %c0 = arith.constant 0 : index
    %c0_0 = arith.constant 0 : index
    %0 = vector.load %arg1[%c0, %c0_0] : memref<8x32xf32, #tpu.memory_space<vmem>>, vector<8x32xf32>
    %c0_1 = arith.constant 0 : index
    %c0_2 = arith.constant 0 : index
    %1 = vector.load %arg2[%c0_1, %c0_2] : memref<32x128xf32, #tpu.memory_space<vmem>>, vector<32x128xf32>
    %cst = arith.constant dense<0.000000e+00> : vector<8x128xf32>
    %2 = tpu.matmul %0, %1, %cst {dimension_numbers = #tpu.dot_dimension_numbers<[1], [0], [0], [1], [0, 0, 1, 1], [], []>} : vector<8x32xf32>, vector<32x128xf32>, vector<8x128xf32> -> vector<8x128xf32>
    %c0_3 = arith.constant 0 : index
    %c0_4 = arith.constant 0 : index
    %3 = vector.load %arg3[%c0_3, %c0_4] : memref<1x128xf32, #tpu.memory_space<vmem>>, vector<1x128xf32>
    %4 = vector.broadcast %3 : vector<1x128xf32> to vector<8x128xf32>
    %5 = arith.addf %2, %4 : vector<8x128xf32>
    %cst_5 = arith.constant 0.000000e+00 : f32
    %6 = vector.broadcast %cst_5 : f32 to vector<8x128xf32>
    %7 = arith.maximumf %5, %6 : vector<8x128xf32>
    %c0_6 = arith.constant 0 : index
    %c0_7 = arith.constant 0 : index
    %8 = vector.load %arg4[%c0_6, %c0_7] : memref<128x128xf32, #tpu.memory_space<vmem>>, vector<128x128xf32>
    %cst_8 = arith.constant dense<0.000000e+00> : vector<8x128xf32>
    %9 = tpu.matmul %7, %8, %cst_8 {dimension_numbers = #tpu.dot_dimension_numbers<[1], [0], [0], [1], [0, 0, 1, 1], [], []>} : vector<8x128xf32>, vector<128x128xf32>, vector<8x128xf32> -> vector<8x128xf32>
    %c0_9 = arith.constant 0 : index
    %c0_10 = arith.constant 0 : index
    %10 = vector.load %arg5[%c0_9, %c0_10] : memref<1x128xf32, #tpu.memory_space<vmem>>, vector<1x128xf32>
    %11 = vector.broadcast %10 : vector<1x128xf32> to vector<8x128xf32>
    %12 = arith.addf %9, %11 : vector<8x128xf32>
    %13 = vector.extract_strided_slice %12 {offsets = [0, 0], sizes = [8, 16], strides = [1, 1]} : vector<8x128xf32> to vector<8x16xf32>
    %c0_11 = arith.constant 0 : index
    %c0_12 = arith.constant 0 : index
    %14 = vector.load %arg6[%c0_11, %c0_12] : memref<8x16xf32, #tpu.memory_space<vmem>>, vector<8x16xf32>
    tpu.vector_store %arg6[%c0_11, %c0_12], %13 {strides = array<i32>} : memref<8x16xf32, #tpu.memory_space<vmem>>, vector<8x16xf32>,
    return
  }
  func.func @transform_0(%arg0: i32) -> (i32, i32) {
    %c0_i32 = arith.constant 0 : i32
    %c0_i32_0 = arith.constant 0 : i32
    return %arg0, %c0_i32 : i32, i32
  }
  func.func @transform_1(%arg0: i32) -> (i32, i32) {
    %c0_i32 = arith.constant 0 : i32
    %c0_i32_0 = arith.constant 0 : i32
    %c0_i32_1 = arith.constant 0 : i32
    return %c0_i32, %c0_i32_0 : i32, i32
  }
  func.func @transform_2(%arg0: i32) -> (i32, i32) {
    %c0_i32 = arith.constant 0 : i32
    %c0_i32_0 = arith.constant 0 : i32
    %c0_i32_1 = arith.constant 0 : i32
    return %c0_i32, %c0_i32_0 : i32, i32
  }
  func.func @transform_3(%arg0: i32) -> (i32, i32) {
    %c0_i32 = arith.constant 0 : i32
    %c0_i32_0 = arith.constant 0 : i32
    %c0_i32_1 = arith.constant 0 : i32
    return %c0_i32, %c0_i32_0 : i32, i32
  }
  func.func @transform_4(%arg0: i32) -> (i32, i32) {
    %c0_i32 = arith.constant 0 : i32
    %c0_i32_0 = arith.constant 0 : i32
    %c0_i32_1 = arith.constant 0 : i32
    return %c0_i32, %c0_i32_0 : i32, i32
  }
  func.func @transform_5(%arg0: i32) -> (i32, i32) {
    %c0_i32 = arith.constant 0 : i32
    %c0_i32_0 = arith.constant 0 : i32
    return %arg0, %c0_i32 : i32, i32
  }
}

</mosaic_0001>

<bundles_post_ra>
// kernel: tpu_custom_call.1
= control target key start
LH: loop header
LB: loop body
LE: loop exit
PB: predicated region body
PF: predicated region fallthrough
CT: control target
= control target key end

     0   :  { %10 = vsyncpa [#allocation3], 0  ;;  %s325_s0 = inlined_call_operand.hbm [shape: f32[8,32], index: 0, kind: input, shape index: {}]   ;;  %s326_s1 = inlined_call_operand.hbm [shape: f32[32,128], index: 1, kind: input, shape index: {}]   ;;  %s327_s2 = inlined_call_operand.vmem [shape: f32[1,128], index: 2, kind: input, shape index: {}]   ;;  %s328_s3 = inlined_call_operand.hbm [shape: f32[128,128], index: 3, kind: input, shape index: {}]   ;;  %s329_s4 = inlined_call_operand.vmem [shape: f32[1,128], index: 4, kind: input, shape index: {}]   ;;  %s330_s5 = inlined_call_operand.hbm [shape: f32[8,16], index: 5, kind: output, shape index: {}]  }
   0x1   :  { %11 = vsyncpa [#allocation6], 0  ;;  %s28_s20 = sshll.u32 %s326_s1, 4  ;;  %s29_s20 = int_to_ptr.hbm [resolvable:$true] %s28_s20 }
   0x2   :  { %12 = vsyncpa [#allocation4], 0  ;;  %s271_s21 = smov [#allocation5]   ;;  %s18_s25 = sshll.u32 %s325_s0, 4  ;;  %s19_s25 = int_to_ptr.hbm [resolvable:$true] %s18_s25 }
   0x3   :  { %s30_s22 = sshll.u32 %s271_s21, 4  ;;  %s272_s26 = smov 128   ;;  %s31_s22 = int_to_ptr.vmem [resolvable:$true] %s30_s22 }
   0x4   :  { %s273_s27 = smov 8   ;;  %s274_s28 = smov [#allocation2]  }
   0x5   :  { %36 = dma.hbm_to_vmem [thread:$0]  %s29_s20, 512, %s31_s22, [#allocation6], %s272_s26, %s272_s26, %s273_s27  }
   0x6   :  { %s20_s29 = sshll.u32 %s274_s28, 4  ;;  %s43_s7 = sshll.u32 %s328_s3, 4  ;;  %s21_s29 = int_to_ptr.vmem [resolvable:$true] %s20_s29  ;;  %s44_s7 = int_to_ptr.hbm [resolvable:$true] %s43_s7 }
   0x7   :  { %23 = dma.hbm_to_vmem [thread:$0]  %s19_s25, 128, %s21_s29, [#allocation3]  }
   0x8   :  { %s275_s1 = smov [#allocation7]  }
   0x9   :  { %s45_s8 = sshll.u32 %s275_s1, 4  ;;  %s46_s8 = int_to_ptr.vmem [resolvable:$true] %s45_s8 }
   0xa   :  { %51 = dma.hbm_to_vmem [thread:$0]  %s44_s7, 2048, %s46_s8, [#allocation6], %s272_s26, %s272_s26, %s273_s27  }
   0xb   :  { %265 = dma.done.wait [#allocation3], 128  }
   0xc   :  { %266 = vsyncadd [#allocation3], 4294967168 }
   0xd   :  { %267 = dma.done.wait [#allocation6], 2560  }
   0xe   :  { %268 = vsyncadd [#allocation6], 4294964736  ;;  %v70_v0 = vld [vmem:[#allocation5 + $0x18] sm:$0xff]  ;;  %v69_v1 = vld [vmem:[#allocation5 + $0x10] sm:$0xff]  ;;  %vm75_vm0 = vcmask 261120   ;;  %s276_s11 = smov [#allocation8]  }
   0xf   :  { %91 = vmatpush.msra.mxu0 %v70_v0  ;;  %v115_v2 = vld [vmem:[#allocation7 + $0x78] sm:$0xff]  ;;  %v68_v3 = vld [vmem:[#allocation5 + $0x8] sm:$0xff]  ;;  %v114_v4 = vld [vmem:[#allocation7 + $0x70] sm:$0xff]  ;;  %s147_s12 = sshll.u32 %s276_s11, 4  ;;  %s149_s15 = sshll.u32 %s330_s5, 4  ;;  %vm140_vm1 = vcmask 130048   ;;  %s148_s12 = int_to_ptr.vmem [resolvable:$true] %s147_s12  ;;  %s150_s15 = int_to_ptr.hbm [resolvable:$true] %s149_s15 }
  0x10   :  { %120 = vmatpush.msra.mxu1 %v115_v2  ;;  %v113_v5 = vld [vmem:[#allocation7 + $0x68] sm:$0xff]  ;;  %v67_v6 = vld [vmem:[#allocation5] sm:$0xff]  ;;  %v66_v7 = vld [vmem:[#allocation2] sm:$0xff] }
  0x11   :  { %92 = vmatpush.msra.mxu0 %v69_v1  ;;  %v112_v8 = vld [vmem:[#allocation7 + $0x60] sm:$0xff]  ;;  %v111_v9 = vld [vmem:[#allocation7 + $0x58] sm:$0xff]  ;;  %v110_v10 = vld [vmem:[#allocation7 + $0x50] sm:$0xff] }
  0x12   :  { %121 = vmatpush.msra.mxu1 %v114_v4  ;;  %v109_v11 = vld [vmem:[#allocation7 + $0x48] sm:$0xff]  ;;  %v108_v12 = vld [vmem:[#allocation7 + $0x40] sm:$0xff]  ;;  %v107_v13 = vld [vmem:[#allocation7 + $0x38] sm:$0xff] }
  0x13   :  { %93 = vmatpush.msra.mxu0 %v68_v3  ;;  %v106_v14 = vld [vmem:[#allocation7 + $0x30] sm:$0xff]  ;;  %v105_v15 = vld [vmem:[#allocation7 + $0x28] sm:$0xff]  ;;  %v104_v16 = vld [vmem:[#allocation7 + $0x20] sm:$0xff] }
  0x14   :  { %122 = vmatpush.msra.mxu1 %v113_v5  ;;  %v103_v17 = vld [vmem:[#allocation7 + $0x18] sm:$0xff]  ;;  %v102_v18 = vld [vmem:[#allocation7 + $0x10] sm:$0xff]  ;;  %v101_v19 = vld [vmem:[#allocation7 + $0x8] sm:$0xff] }
  0x15   :  { %94 = vmatpush.msra.mxu0 %v67_v6  ;;  %v100_v20 = vld [vmem:[#allocation7] sm:$0xff]  ;;  %v167_v21 = vld [vmem:[%s327_s2] ss:$0 sm:$0xff] }
  0x16   :  { %160 = vmatmul.msk.f32.vlgmr.msra.gmra.mxu0 %vm75_vm0, %v66_v7  ;;  %123 = vmatpush.msra.mxu1 %v112_v8  ;;  %v168_v25 = vld [vmem:[%s329_s4] ss:$0 sm:$0xff] }
  0x18   :  { %124 = vmatpush.msra.mxu1 %v111_v9 }
  0x1a   :  { %125 = vmatpush.msra.mxu1 %v110_v10 }
  0x1c   :  { %126 = vmatpush.msra.mxu1 %v109_v11 }
  0x1e   :  { %127 = vmatpush.msra.mxu1 %v108_v12 }
  0x20   :  { %128 = vmatpush.msra.mxu1 %v107_v13 }
  0x22   :  { %129 = vmatpush.msra.mxu1 %v106_v14 }
  0x24   :  { %130 = vmatpush.msra.mxu1 %v105_v15 }
  0x26   :  { %131 = vmatpush.msra.mxu1 %v104_v16 }
  0x28   :  { %132 = vmatpush.msra.mxu1 %v103_v17 }
  0x2a   :  { %133 = vmatpush.msra.mxu1 %v102_v18 }
  0x2c   :  { %134 = vmatpush.msra.mxu1 %v101_v19 }
  0x2e   :  { %135 = vmatpush.msra.mxu1 %v100_v20 }
  0x93   :  { %v96_v22 = vpop.f32.mrf.mxu0 }
  0x94   :  { %v97_v23 = vadd.f32 %v167_v21, %v96_v22 }
  0x96   :  { %v99_v24 = vmax.f32 %v97_v23, 0.0 }
  0x98   :  { %136 = vmatmul.f32.vlgmr.msra.gmra.mxu1 %v99_v24 }
 0x115   :  { %v137_v26 = vpop.f32.mrf.mxu1 }
 0x116   :  { %v138_v27 = vadd.f32 %v168_v25, %v137_v26 }
 0x118   :  { %141 = vst.msk [vmem:[#allocation8] sm:$0xff] %vm140_vm1, %v138_v27 }
 0x119   :  { %152 = dma.vmem_to_hbm [thread:$0]  %s148_s12, 128, %s150_s15, [#allocation4]  }
 0x11a   :  { %269 = dma.done.wait [#allocation4], 128  }
 0x11b   :  { %270 = vsyncadd [#allocation4], 4294967168 }
 0x11c   :  { %157 = vsyncpa [#allocation3], 1 }
 0x11d   :  { %158 = vsyncpa [#allocation6], 1 }
 0x11e   :  { %159 = vsyncpa [#allocation4], 1 }

</bundles_post_ra>
